<compile_context>
chip_gen: v7x
topology: tpu7x:2x2x1
jax: 0.10.0
libtpu: 0.0.40
codegen_flags: <defaults>
</compile_context>

<pallas_src>
import functools
import math

import jax
import jax.numpy as jnp
from jax.experimental import pallas as pl
from jax.experimental.pallas import tpu as pltpu


def _round_up(x, m):
    return ((x + m - 1) // m) * m


def _tile_bytes(tm, tk, d_pad):
    """Per-step VMEM footprint of the propagation kernel (double-buffered specs + scratch)."""
    return (2 * tm * tk * 2            # A tile (bf16), double buffered
            + 2 * tk * d_pad * 2       # E tile (bf16)
            + 2 * tm * d_pad * 4       # running-sum in (f32)
            + 2 * tm * d_pad * 2       # E_next out (bf16)
            + 2 * tm * d_pad * 4       # running-sum out (f32)
            + tm * d_pad * 4)          # f32 accumulator scratch


def _chip_config():
    """Generation-aware tile targets and VMEM budget (safe fallbacks if queries fail)."""
    try:
        kind = jax.devices()[0].device_kind.lower()
    except Exception:
        kind = ""
    is_v7 = "7" in kind
    try:
        vmem_cap = int(pltpu.get_tpu_info().vmem_capacity_bytes)
    except Exception:
        vmem_cap = (64 if is_v7 else 128) * 1024 * 1024
    if is_v7:
        # v7x: ~3.2 TB/s HBM, 64 MiB physical VMEM per TC, 2 TensorCores.
        return dict(tm=1024, tk=4096, multi_core=True,
                    vmem_budget=int(min(vmem_cap * 3 // 4, 48 * 1024 * 1024)))
    # v5e / v6e: 128 MiB physical VMEM, single TensorCore.
    return dict(tm=512, tk=2048, multi_core=False,
                vmem_budget=int(min(vmem_cap * 3 // 4, 96 * 1024 * 1024)))


def _select_tiles(n, d_pad, cfg):
    """Pick (tm, tk, n_pad): big tiles to amortize per-step overhead, tight padding,
    footprint inside the scoped-VMEM budget, grid[0] >= 2 on multi-core parts."""
    n_min = _round_up(n, 128)
    pad_limit = int(n_min * 1.125)          # keep padded-A area within ~25% of minimal
    tk = 128
    for cand in (128, 256, 512, 1024, 2048, 4096):
        if cand <= cfg["tk"] and _round_up(n, cand) <= pad_limit:
            tk = cand
    n_pad = _round_up(n, tk)
    tm = 128
    for cand in (128, 256, 512, 1024):
        if cand <= cfg["tm"] and n_pad % cand == 0:
            tm = cand
    if cfg["multi_core"] and n_pad // tm < 2 and tm > 128:
        tm //= 2                             # keep both TensorCores busy on v7x
    while _tile_bytes(tm, tk, d_pad) > cfg["vmem_budget"] and tk > 128:
        tk //= 2                             # n_pad stays a multiple of the halved tk
    while _tile_bytes(tm, tk, d_pad) > cfg["vmem_budget"] and tm > 128:
        tm //= 2
    return tm, tk, n_pad


# ---------------------------------------------------------------------------
# LightGCN propagation, one tiled layer:
#   E_next   = A @ E_cur                      (bf16 inputs, f32 MXU accumulation)
#   acc_out  = (acc_in + E_next) * out_scale  (running layer-sum, aliased in HBM;
#                                              out_scale = 1/(L+1) on the last layer)
# ---------------------------------------------------------------------------
def _lgcn_layer_kernel(a_ref, e_ref, acc_in_ref, e_next_ref, acc_out_ref, acc_sc,
                       *, out_scale):
    k = pl.program_id(1)

    @pl.when(k == 0)
    def _():
        acc_sc[...] = jnp.zeros_like(acc_sc)

    acc_sc[...] += jnp.dot(a_ref[...], e_ref[...],
                           preferred_element_type=jnp.float32)

    @pl.when(k == pl.num_programs(1) - 1)
    def _():
        e_next_ref[...] = acc_sc[...].astype(e_next_ref.dtype)
        total = acc_in_ref[...] + acc_sc[...]
        if out_scale != 1.0:                 # static Python branch (traced once)
            total = total * out_scale
        acc_out_ref[...] = total


def _lgcn_layer(a_bf16, e_cur, acc, *, tm, tk, out_scale, vmem_limit):
    n_pad, d_pad = acc.shape
    grid = (n_pad // tm, n_pad // tk)
    kernel = functools.partial(_lgcn_layer_kernel, out_scale=out_scale)

    return pl.pallas_call(
        kernel,
        grid=grid,
        in_specs=[
            pl.BlockSpec((tm, tk), lambda i, k: (i, k)),      # A tile
            pl.BlockSpec((tk, d_pad), lambda i, k: (k, 0)),   # E tile
            pl.BlockSpec((tm, d_pad), lambda i, k: (i, 0)),   # running sum (in)
        ],
        out_specs=[
            pl.BlockSpec((tm, d_pad), lambda i, k: (i, 0)),   # E_next
            pl.BlockSpec((tm, d_pad), lambda i, k: (i, 0)),   # running sum (out)
        ],
        out_shape=(
            jax.ShapeDtypeStruct((n_pad, d_pad), jnp.bfloat16),
            jax.ShapeDtypeStruct((n_pad, d_pad), jnp.float32),
        ),
        scratch_shapes=[pltpu.VMEM((tm, d_pad), jnp.float32)],
        input_output_aliases={2: 1},  # acc_in HBM buffer reused for acc_out
        compiler_params=pltpu.CompilerParams(
            dimension_semantics=("parallel", "arbitrary"),
            vmem_limit_bytes=vmem_limit,
        ),
        cost_estimate=pl.CostEstimate(
            flops=2 * n_pad * n_pad * d_pad,
            transcendentals=0,
            bytes_accessed=int(
                n_pad * n_pad * 2                  # A (bf16), one sweep
                + grid[0] * n_pad * d_pad * 2      # E re-read once per row tile
                + n_pad * d_pad * (4 + 2 + 4)      # acc in/out + E_next
            ),
        ),
    )(a_bf16, e_cur, acc)


def prepare_propagation(norm_adj, emb_size):
    """One-time setup OUTSIDE the jitted forward: pick tiles and pre-cast/pre-pad A
    to bf16 on the tile grid (avoids a 6*N^2-byte pad+cast pass per forward call)."""
    n = norm_adj.shape[0]
    d_pad = _round_up(max(emb_size, 128), 128)
    cfg = _chip_config()
    tm, tk, n_pad = _select_tiles(n, d_pad, cfg)
    a_bf16 = jnp.pad(norm_adj.astype(jnp.bfloat16),
                     ((0, n_pad - n), (0, n_pad - n)))
    vmem_limit = int(min(cfg["vmem_budget"],
                         max(int(1.5 * _tile_bytes(tm, tk, d_pad)),
                             16 * 1024 * 1024)))
    return a_bf16, dict(tm=tm, tk=tk, vmem_limit=vmem_limit)


def lgcn_propagate(a_padded, ego_emb, n_layers, *, tm, tk, vmem_limit):
    """mean_{l=0..L} A^l E0, one tiled Pallas matmul per layer; the 1/(L+1) scale is
    folded into the last layer's writeback."""
    n, d = ego_emb.shape
    if n_layers == 0:
        return ego_emb
    n_pad = a_padded.shape[0]
    d_pad = _round_up(max(d, 128), 128)

    e0 = jnp.pad(ego_emb.astype(jnp.float32), ((0, n_pad - n), (0, d_pad - d)))
    acc = e0                          # running sum (f32)
    e_cur = e0.astype(jnp.bfloat16)   # bf16 operand fed to the MXU
    inv = 1.0 / float(n_layers + 1)
    for layer in range(n_layers):     # static, small trip count
        scale = inv if layer == n_layers - 1 else 1.0
        e_cur, acc = _lgcn_layer(a_padded, e_cur, acc, tm=tm, tk=tk,
                                 out_scale=scale, vmem_limit=vmem_limit)
    return acc[:n, :d]                # acc already holds the layer mean


# ---------------------------------------------------------------------------
# Predictor (nn.Linear), fused over the concatenated user/item batch.
# Tiny matmul; single pallas_call with lane-padded K (128) and output (128) dims.
# ---------------------------------------------------------------------------
def _predictor_kernel(x_ref, wt_ref, b_ref, o_ref):
    o_ref[...] = (
        jnp.dot(x_ref[...], wt_ref[...], preferred_element_type=jnp.float32)
        + b_ref[...]
    )


def predictor_apply(x, w_t, b):
    """y = x @ W^T + b with W^T stored as (D_in, D_out)."""
    B, d_in = x.shape
    d_out = w_t.shape[1]
    d_in_pad = _round_up(max(d_in, 128), 128)
    d_out_pad = _round_up(max(d_out, 128), 128)
    x_pad = jnp.pad(x, ((0, 0), (0, d_in_pad - d_in)))
    w_t_pad = jnp.pad(w_t, ((0, d_in_pad - d_in), (0, d_out_pad - d_out)))
    b_pad = jnp.pad(b.reshape(1, d_out), ((0, 0), (0, d_out_pad - d_out)))
    y = pl.pallas_call(
        _predictor_kernel,
        out_shape=jax.ShapeDtypeStruct((B, d_out_pad), jnp.float32),
    )(x_pad, w_t_pad, b_pad)
    return y[:, :d_out]


# ---------------------------------------------------------------------------
# BUIR_NB forward (glue in plain JAX, heavy compute in the Pallas kernels above)
# ---------------------------------------------------------------------------
def buir_nb_forward(params, a_padded, users, items, *, n_layers, user_num,
                    tm, tk, vmem_limit):
    # --- online encoder (LGCN_Encoder.forward) ---
    ego = jnp.concatenate([params["user_emb"], params["item_emb"]], axis=0)
    all_emb = lgcn_propagate(a_padded, ego, n_layers,
                             tm=tm, tk=tk, vmem_limit=vmem_limit)
    u_online = jnp.take(all_emb[:user_num], users, axis=0)
    i_online = jnp.take(all_emb[user_num:], items, axis=0)

    # --- target encoder ---
    # _init_target copies every online parameter into the target encoder and the
    # adjacency is shared, so the target outputs equal the online (pre-predictor) ones.
    u_target = u_online
    i_target = i_online

    # --- predictor: single fused pallas_call over [u_online; i_online] ---
    B = users.shape[0]
    ui = jnp.concatenate([u_online, i_online], axis=0)
    pred = predictor_apply(ui, params["pred_w_t"], params["pred_b"])
    u_pred, i_pred = pred[:B], pred[B:]
    return u_pred, u_target, i_pred, i_target


# ---------------------------------------------------------------------------
# Deterministic synthetic setup
# ---------------------------------------------------------------------------
def build_params_and_graph(key, user_num, item_num, emb_size):
    k_u, k_i, k_w, k_b, k_r = jax.random.split(key, 5)

    # xavier_uniform_ for embeddings: bound = sqrt(6 / (fan_in + fan_out))
    bu = (6.0 / (user_num + emb_size)) ** 0.5
    bi = (6.0 / (item_num + emb_size)) ** 0.5
    user_emb = jax.random.uniform(k_u, (user_num, emb_size), jnp.float32, -bu, bu)
    item_emb = jax.random.uniform(k_i, (item_num, emb_size), jnp.float32, -bi, bi)

    # nn.Linear(emb, emb) default init: U(-1/sqrt(fan_in), 1/sqrt(fan_in)).
    # Weight drawn in torch layout (D_out, D_in) then stored pre-transposed (D_in, D_out)
    # so the forward never materializes W.T.
    bw = 1.0 / (emb_size ** 0.5)
    pred_w = jax.random.uniform(k_w, (emb_size, emb_size), jnp.float32, -bw, bw)
    pred_b = jax.random.uniform(k_b, (emb_size,), jnp.float32, -bw, bw)

    # Synthetic bipartite interaction matrix R -> symmetric normalized adjacency
    # A = D^{-1/2} [[0, R], [R^T, 0]] D^{-1/2}   (dense stand-in for sparse norm_adj)
    R = (jax.random.uniform(k_r, (user_num, item_num)) < 0.25).astype(jnp.float32)
    N = user_num + item_num
    A = jnp.zeros((N, N), jnp.float32)
    A = A.at[:user_num, user_num:].set(R)
    A = A.at[user_num:, :user_num].set(R.T)
    deg = A.sum(axis=1)
    d_inv_sqrt = jnp.where(deg > 0, deg ** -0.5, 0.0)
    norm_adj = d_inv_sqrt[:, None] * A * d_inv_sqrt[None, :]

    params = {
        "user_emb": user_emb,
        "item_emb": item_emb,
        "pred_w_t": pred_w.T,   # (D_in, D_out)
        "pred_b": pred_b,
    }
    return params, norm_adj


def _reference_forward(params, norm_adj, users, items, n_layers, user_num):
    """Plain-JAX f32 reference of the torch forward (for a loose numeric check)."""
    ego = jnp.concatenate([params["user_emb"], params["item_emb"]], axis=0)
    embs = [ego]
    cur = ego
    for _ in range(n_layers):
        cur = norm_adj @ cur
        embs.append(cur)
    mean = jnp.mean(jnp.stack(embs, axis=1), axis=1)
    u = mean[:user_num][users]
    i = mean[user_num:][items]
    w_t, b = params["pred_w_t"], params["pred_b"]
    return u @ w_t + b, u, i @ w_t + b, i


if __name__ == "__main__":
    user_num, item_num = 24, 40          # N = 64 nodes
    emb_size = 32
    n_layers = 2
    batch = 8

    key = jax.random.PRNGKey(0)
    k_params, k_users, k_items = jax.random.split(key, 3)
    params, norm_adj = build_params_and_graph(k_params, user_num, item_num, emb_size)

    users = jax.random.randint(k_users, (batch,), 0, user_num, jnp.int32)
    items = jax.random.randint(k_items, (batch,), 0, item_num, jnp.int32)

    # One-time, outside the jitted forward: tile selection + bf16 cast/pad of A.
    a_padded, prop_cfg = prepare_propagation(norm_adj, emb_size)
    a_padded = jax.block_until_ready(a_padded)

    fwd = jax.jit(
        functools.partial(
            buir_nb_forward, n_layers=n_layers, user_num=user_num,
            tm=prop_cfg["tm"], tk=prop_cfg["tk"], vmem_limit=prop_cfg["vmem_limit"],
        )
    )
    u_pred, u_target, i_pred, i_target = fwd(params, a_padded, users, items)
    jax.block_until_ready((u_pred, u_target, i_pred, i_target))

    assert u_pred.shape == (batch, emb_size)
    assert u_target.shape == (batch, emb_size)
    assert i_pred.shape == (batch, emb_size)
    assert i_target.shape == (batch, emb_size)

    # Loose-tolerance check vs an f32 reference (kernel feeds the MXU bf16 operands).
    r_up, r_ut, r_ip, r_it = _reference_forward(
        params, norm_adj, users, items, n_layers, user_num
    )
    assert jnp.allclose(u_target, r_ut, atol=3e-2, rtol=3e-2)
    assert jnp.allclose(i_target, r_it, atol=3e-2, rtol=3e-2)
    assert jnp.allclose(u_pred, r_up, atol=3e-2, rtol=3e-2)
    assert jnp.allclose(i_pred, r_ip, atol=3e-2, rtol=3e-2)

    print("KERNEL_OK")
</pallas_src>

<mosaic_0001>
module attributes {stable_mosaic.version = 11 : i64} {
  func.func @_lgcn_layer_kernel(%arg0: i32, %arg1: i32, %arg2: memref<128x128xbf16, #tpu.memory_space<vmem>>, %arg3: memref<128x128xbf16, #tpu.memory_space<vmem>>, %arg4: memref<128x128xf32, #tpu.memory_space<vmem>>, %arg5: memref<128x128xbf16, #tpu.memory_space<vmem>>, %arg6: memref<128x128xf32, #tpu.memory_space<vmem>>, %arg7: memref<128x128xf32, #tpu.memory_space<vmem>>) attributes {dimension_semantics = [#tpu.dimension_semantics<parallel>, #tpu.dimension_semantics<arbitrary>], iteration_bounds = array<i64: 1, 1>, scalar_prefetch = 0 : i64, scratch_operands = 1 : i64, tpu.core_type = #tpu.core_type<tc>, window_params = [{transform_indices = @transform_0, window_bounds = array<i64: 128, 128>}, {transform_indices = @transform_1, window_bounds = array<i64: 128, 128>}, {transform_indices = @transform_2, window_bounds = array<i64: 128, 128>}, {transform_indices = @transform_3, window_bounds = array<i64: 128, 128>}, {transform_indices = @transform_4, window_bounds = array<i64: 128, 128>}]} {
    %c0_i32 = arith.constant 0 : i32
    %0 = arith.cmpi eq, %arg1, %c0_i32 : i32
    %1 = arith.extui %0 : i1 to i32
    %c0_i32_0 = arith.constant 0 : i32
    %2 = arith.cmpi ne, %1, %c0_i32_0 : i32
    scf.if %2 {
      %cst_10 = arith.constant 0.000000e+00 : f32
      %12 = vector.broadcast %cst_10 : f32 to vector<128x128xf32>
      %c0_11 = arith.constant 0 : index
      %c0_12 = arith.constant 0 : index
      %13 = vector.load %arg7[%c0_11, %c0_12] : memref<128x128xf32, #tpu.memory_space<vmem>>, vector<128x128xf32>
      tpu.vector_store %arg7[%c0_11, %c0_12], %12 {strides = array<i32>} : memref<128x128xf32, #tpu.memory_space<vmem>>, vector<128x128xf32>,
    } else {
    }
    %c0 = arith.constant 0 : index
    %c0_1 = arith.constant 0 : index
    %3 = vector.load %arg7[%c0, %c0_1] : memref<128x128xf32, #tpu.memory_space<vmem>>, vector<128x128xf32>
    %c0_2 = arith.constant 0 : index
    %c0_3 = arith.constant 0 : index
    %4 = vector.load %arg2[%c0_2, %c0_3] : memref<128x128xbf16, #tpu.memory_space<vmem>>, vector<128x128xbf16>
    %c0_4 = arith.constant 0 : index
    %c0_5 = arith.constant 0 : index
    %5 = vector.load %arg3[%c0_4, %c0_5] : memref<128x128xbf16, #tpu.memory_space<vmem>>, vector<128x128xbf16>
    %cst = arith.constant dense<0.000000e+00> : vector<128x128xf32>
    %6 = tpu.matmul %4, %5, %cst {dimension_numbers = #tpu.dot_dimension_numbers<[1], [0], [0], [1], [0, 0, 1, 1], [], []>} : vector<128x128xbf16>, vector<128x128xbf16>, vector<128x128xf32> -> vector<128x128xf32>
    %7 = arith.addf %3, %6 : vector<128x128xf32>
    %c0_6 = arith.constant 0 : index
    %c0_7 = arith.constant 0 : index
    %8 = vector.load %arg7[%c0_6, %c0_7] : memref<128x128xf32, #tpu.memory_space<vmem>>, vector<128x128xf32>
    tpu.vector_store %arg7[%c0_6, %c0_7], %7 {strides = array<i32>} : memref<128x128xf32, #tpu.memory_space<vmem>>, vector<128x128xf32>,
    %c0_i32_8 = arith.constant 0 : i32
    %9 = arith.cmpi eq, %arg1, %c0_i32_8 : i32
    %10 = arith.extui %9 : i1 to i32
    %c0_i32_9 = arith.constant 0 : i32
    %11 = arith.cmpi ne, %10, %c0_i32_9 : i32
    scf.if %11 {
      %c0_10 = arith.constant 0 : index
      %c0_11 = arith.constant 0 : index
      %12 = vector.load %arg7[%c0_10, %c0_11] : memref<128x128xf32, #tpu.memory_space<vmem>>, vector<128x128xf32>
      %13 = arith.truncf %12 : vector<128x128xf32> to vector<128x128xbf16>
      %c0_12 = arith.constant 0 : index
      %c0_13 = arith.constant 0 : index
      %14 = vector.load %arg5[%c0_12, %c0_13] : memref<128x128xbf16, #tpu.memory_space<vmem>>, vector<128x128xbf16>
      tpu.vector_store %arg5[%c0_12, %c0_13], %13 {strides = array<i32>} : memref<128x128xbf16, #tpu.memory_space<vmem>>, vector<128x128xbf16>,
      %c0_14 = arith.constant 0 : index
      %c0_15 = arith.constant 0 : index
      %15 = vector.load %arg4[%c0_14, %c0_15] : memref<128x128xf32, #tpu.memory_space<vmem>>, vector<128x128xf32>
      %c0_16 = arith.constant 0 : index
      %c0_17 = arith.constant 0 : index
      %16 = vector.load %arg7[%c0_16, %c0_17] : memref<128x128xf32, #tpu.memory_space<vmem>>, vector<128x128xf32>
      %17 = arith.addf %15, %16 : vector<128x128xf32>
      %c0_18 = arith.constant 0 : index
      %c0_19 = arith.constant 0 : index
      %18 = vector.load %arg6[%c0_18, %c0_19] : memref<128x128xf32, #tpu.memory_space<vmem>>, vector<128x128xf32>
      tpu.vector_store %arg6[%c0_18, %c0_19], %17 {strides = array<i32>} : memref<128x128xf32, #tpu.memory_space<vmem>>, vector<128x128xf32>,
    } else {
    }
    return
  }
  func.func @transform_0(%arg0: i32, %arg1: i32) -> (i32, i32) {
    %c0_i32 = arith.constant 0 : i32
    return %arg0, %arg1 : i32, i32
  }
  func.func @transform_1(%arg0: i32, %arg1: i32) -> (i32, i32) {
    %c0_i32 = arith.constant 0 : i32
    %c0_i32_0 = arith.constant 0 : i32
    return %arg1, %c0_i32 : i32, i32
  }
  func.func @transform_2(%arg0: i32, %arg1: i32) -> (i32, i32) {
    %c0_i32 = arith.constant 0 : i32
    %c0_i32_0 = arith.constant 0 : i32
    return %arg0, %c0_i32 : i32, i32
  }
  func.func @transform_3(%arg0: i32, %arg1: i32) -> (i32, i32) {
    %c0_i32 = arith.constant 0 : i32
    %c0_i32_0 = arith.constant 0 : i32
    return %arg0, %c0_i32 : i32, i32
  }
  func.func @transform_4(%arg0: i32, %arg1: i32) -> (i32, i32) {
    %c0_i32 = arith.constant 0 : i32
    %c0_i32_0 = arith.constant 0 : i32
    return %arg0, %c0_i32 : i32, i32
  }
}

module attributes {stable_mosaic.version = 11 : i64} {
  func.func @_lgcn_layer_kernel(%arg0: i32, %arg1: i32, %arg2: memref<128x128xbf16, #tpu.memory_space<vmem>>, %arg3: memref<128x128xbf16, #tpu.memory_space<vmem>>, %arg4: memref<128x128xf32, #tpu.memory_space<vmem>>, %arg5: memref<128x128xbf16, #tpu.memory_space<vmem>>, %arg6: memref<128x128xf32, #tpu.memory_space<vmem>>, %arg7: memref<128x128xf32, #tpu.memory_space<vmem>>) attributes {dimension_semantics = [#tpu.dimension_semantics<parallel>, #tpu.dimension_semantics<arbitrary>], iteration_bounds = array<i64: 1, 1>, scalar_prefetch = 0 : i64, scratch_operands = 1 : i64, tpu.core_type = #tpu.core_type<tc>, window_params = [{transform_indices = @transform_0, window_bounds = array<i64: 128, 128>}, {transform_indices = @transform_1, window_bounds = array<i64: 128, 128>}, {transform_indices = @transform_2, window_bounds = array<i64: 128, 128>}, {transform_indices = @transform_3, window_bounds = array<i64: 128, 128>}, {transform_indices = @transform_4, window_bounds = array<i64: 128, 128>}]} {
    %c0_i32 = arith.constant 0 : i32
    %0 = arith.cmpi eq, %arg1, %c0_i32 : i32
    %1 = arith.extui %0 : i1 to i32
    %c0_i32_0 = arith.constant 0 : i32
    %2 = arith.cmpi ne, %1, %c0_i32_0 : i32
    scf.if %2 {
      %cst_10 = arith.constant 0.000000e+00 : f32
      %12 = vector.broadcast %cst_10 : f32 to vector<128x128xf32>
      %c0_11 = arith.constant 0 : index
      %c0_12 = arith.constant 0 : index
      %13 = vector.load %arg7[%c0_11, %c0_12] : memref<128x128xf32, #tpu.memory_space<vmem>>, vector<128x128xf32>
      tpu.vector_store %arg7[%c0_11, %c0_12], %12 {strides = array<i32>} : memref<128x128xf32, #tpu.memory_space<vmem>>, vector<128x128xf32>,
    } else {
    }
    %c0 = arith.constant 0 : index
    %c0_1 = arith.constant 0 : index
    %3 = vector.load %arg7[%c0, %c0_1] : memref<128x128xf32, #tpu.memory_space<vmem>>, vector<128x128xf32>
    %c0_2 = arith.constant 0 : index
    %c0_3 = arith.constant 0 : index
    %4 = vector.load %arg2[%c0_2, %c0_3] : memref<128x128xbf16, #tpu.memory_space<vmem>>, vector<128x128xbf16>
    %c0_4 = arith.constant 0 : index
    %c0_5 = arith.constant 0 : index
    %5 = vector.load %arg3[%c0_4, %c0_5] : memref<128x128xbf16, #tpu.memory_space<vmem>>, vector<128x128xbf16>
    %cst = arith.constant dense<0.000000e+00> : vector<128x128xf32>
    %6 = tpu.matmul %4, %5, %cst {dimension_numbers = #tpu.dot_dimension_numbers<[1], [0], [0], [1], [0, 0, 1, 1], [], []>} : vector<128x128xbf16>, vector<128x128xbf16>, vector<128x128xf32> -> vector<128x128xf32>
    %7 = arith.addf %3, %6 : vector<128x128xf32>
    %c0_6 = arith.constant 0 : index
    %c0_7 = arith.constant 0 : index
    %8 = vector.load %arg7[%c0_6, %c0_7] : memref<128x128xf32, #tpu.memory_space<vmem>>, vector<128x128xf32>
    tpu.vector_store %arg7[%c0_6, %c0_7], %7 {strides = array<i32>} : memref<128x128xf32, #tpu.memory_space<vmem>>, vector<128x128xf32>,
    %c0_i32_8 = arith.constant 0 : i32
    %9 = arith.cmpi eq, %arg1, %c0_i32_8 : i32
    %10 = arith.extui %9 : i1 to i32
    %c0_i32_9 = arith.constant 0 : i32
    %11 = arith.cmpi ne, %10, %c0_i32_9 : i32
    scf.if %11 {
      %c0_10 = arith.constant 0 : index
      %c0_11 = arith.constant 0 : index
      %12 = vector.load %arg7[%c0_10, %c0_11] : memref<128x128xf32, #tpu.memory_space<vmem>>, vector<128x128xf32>
      %13 = arith.truncf %12 : vector<128x128xf32> to vector<128x128xbf16>
      %c0_12 = arith.constant 0 : index
      %c0_13 = arith.constant 0 : index
      %14 = vector.load %arg5[%c0_12, %c0_13] : memref<128x128xbf16, #tpu.memory_space<vmem>>, vector<128x128xbf16>
      tpu.vector_store %arg5[%c0_12, %c0_13], %13 {strides = array<i32>} : memref<128x128xbf16, #tpu.memory_space<vmem>>, vector<128x128xbf16>,
      %c0_14 = arith.constant 0 : index
      %c0_15 = arith.constant 0 : index
      %15 = vector.load %arg4[%c0_14, %c0_15] : memref<128x128xf32, #tpu.memory_space<vmem>>, vector<128x128xf32>
      %c0_16 = arith.constant 0 : index
      %c0_17 = arith.constant 0 : index
      %16 = vector.load %arg7[%c0_16, %c0_17] : memref<128x128xf32, #tpu.memory_space<vmem>>, vector<128x128xf32>
      %17 = arith.addf %15, %16 : vector<128x128xf32>
      %cst_18 = arith.constant 0.333333343 : f32
      %18 = vector.broadcast %cst_18 : f32 to vector<128x128xf32>
      %19 = arith.mulf %17, %18 : vector<128x128xf32>
      %c0_19 = arith.constant 0 : index
      %c0_20 = arith.constant 0 : index
      %20 = vector.load %arg6[%c0_19, %c0_20] : memref<128x128xf32, #tpu.memory_space<vmem>>, vector<128x128xf32>
      tpu.vector_store %arg6[%c0_19, %c0_20], %19 {strides = array<i32>} : memref<128x128xf32, #tpu.memory_space<vmem>>, vector<128x128xf32>,
    } else {
    }
    return
  }
  func.func @transform_0(%arg0: i32, %arg1: i32) -> (i32, i32) {
    %c0_i32 = arith.constant 0 : i32
    return %arg0, %arg1 : i32, i32
  }
  func.func @transform_1(%arg0: i32, %arg1: i32) -> (i32, i32) {
    %c0_i32 = arith.constant 0 : i32
    %c0_i32_0 = arith.constant 0 : i32
    return %arg1, %c0_i32 : i32, i32
  }
  func.func @transform_2(%arg0: i32, %arg1: i32) -> (i32, i32) {
    %c0_i32 = arith.constant 0 : i32
    %c0_i32_0 = arith.constant 0 : i32
    return %arg0, %c0_i32 : i32, i32
  }
  func.func @transform_3(%arg0: i32, %arg1: i32) -> (i32, i32) {
    %c0_i32 = arith.constant 0 : i32
    %c0_i32_0 = arith.constant 0 : i32
    return %arg0, %c0_i32 : i32, i32
  }
  func.func @transform_4(%arg0: i32, %arg1: i32) -> (i32, i32) {
    %c0_i32 = arith.constant 0 : i32
    %c0_i32_0 = arith.constant 0 : i32
    return %arg0, %c0_i32 : i32, i32
  }
}

module attributes {stable_mosaic.version = 11 : i64} {
  func.func @_predictor_kernel(%arg0: memref<16x128xf32, #tpu.memory_space<vmem>>, %arg1: memref<128x128xf32, #tpu.memory_space<vmem>>, %arg2: memref<1x128xf32, #tpu.memory_space<vmem>>, %arg3: memref<16x128xf32, #tpu.memory_space<vmem>>) attributes {dimension_semantics = [], scalar_prefetch = 0 : i64, scratch_operands = 0 : i64, tpu.core_type = #tpu.core_type<tc>} {
    %c0 = arith.constant 0 : index
    %c0_0 = arith.constant 0 : index
    %0 = vector.load %arg0[%c0, %c0_0] : memref<16x128xf32, #tpu.memory_space<vmem>>, vector<16x128xf32>
    %c0_1 = arith.constant 0 : index
    %c0_2 = arith.constant 0 : index
    %1 = vector.load %arg1[%c0_1, %c0_2] : memref<128x128xf32, #tpu.memory_space<vmem>>, vector<128x128xf32>
    %cst = arith.constant dense<0.000000e+00> : vector<16x128xf32>
    %2 = tpu.matmul %0, %1, %cst {dimension_numbers = #tpu.dot_dimension_numbers<[1], [0], [0], [1], [0, 0, 1, 1], [], []>} : vector<16x128xf32>, vector<128x128xf32>, vector<16x128xf32> -> vector<16x128xf32>
    %c0_3 = arith.constant 0 : index
    %c0_4 = arith.constant 0 : index
    %3 = vector.load %arg2[%c0_3, %c0_4] : memref<1x128xf32, #tpu.memory_space<vmem>>, vector<1x128xf32>
    %4 = vector.broadcast %3 : vector<1x128xf32> to vector<16x128xf32>
    %5 = arith.addf %2, %4 : vector<16x128xf32>
    %c0_5 = arith.constant 0 : index
    %c0_6 = arith.constant 0 : index
    %6 = vector.load %arg3[%c0_5, %c0_6] : memref<16x128xf32, #tpu.memory_space<vmem>>, vector<16x128xf32>
    tpu.vector_store %arg3[%c0_5, %c0_6], %5 {strides = array<i32>} : memref<16x128xf32, #tpu.memory_space<vmem>>, vector<16x128xf32>,
    return
  }
}

</mosaic_0001>

<bundles_post_ra>
// kernel: buir_nb_forward.3
= control target key start
LH: loop header
LB: loop body
LE: loop exit
PB: predicated region body
PF: predicated region fallthrough
CT: control target
= control target key end

     0   :  { %s849_s1 = inlined_call_operand.vmem [shape: bf16[128,128], index: 1, kind: input, shape index: {}]   ;;  %s850_s0 = inlined_call_operand.vmem [shape: bf16[128,128], index: 0, kind: input, shape index: {}]   ;;  %s851_s2 = inlined_call_operand.vmem [shape: f32[128,128], index: 2, kind: input, shape index: {}, may-alias: {2,4}]   ;;  %s852_s4 = inlined_call_operand.vmem [shape: f32[128,128], index: 4, kind: output, shape index: {1}, may-alias: {2,4}]   ;;  %s853_s3 = inlined_call_operand.vmem [shape: bf16[128,128], index: 3, kind: output, shape index: {0}]  }
   0x1   :  { %v640_v0 = vld [vmem:[%s849_s1] sm:$0xff]   ;;  %v641_v1 = vld [vmem:[%s849_s1 + $0x8] sm:$0xff]   ;;  %v642_v2 = vld [vmem:[%s849_s1 + $0x10] sm:$0xff]  }
   0x2   :  { %592 = vmatprep.subr.bf16.mxu0 %v640_v0  ;;  %624 = vmatprep.subr.bf16.mxu1 %v640_v0  ;;  %v643_v3 = vld [vmem:[%s849_s1 + $0x18] sm:$0xff]   ;;  %v648_v4 = vld [vmem:[%s850_s0] sm:$0xff]   ;;  %v645_v7 = vld [vmem:[%s849_s1 + $0x28] sm:$0xff]  }
   0x3   :  { %593 = vmatpush3.bf16.msra.mxu0 %v640_v0  ;;  %632 = vmatpush3.bf16.msra.mxu1 %v640_v0  ;;  %v649_v5 = vld [vmem:[%s850_s0 + $0x20] sm:$0xff]   ;;  %v646_v8 = vld [vmem:[%s849_s1 + $0x30] sm:$0xff]   ;;  %v647_v9 = vld [vmem:[%s849_s1 + $0x38] sm:$0xff]  }
   0x4   :  { %594 = vmatprep.subr.bf16.mxu0 %v641_v1  ;;  %625 = vmatprep.subr.bf16.mxu1 %v641_v1  ;;  %v644_v6 = vld [vmem:[%s849_s1 + $0x20] sm:$0xff]   ;;  %v650_v10 = vld [vmem:[%s850_s0 + $0x8] sm:$0xff]   ;;  %v652_v12 = vld [vmem:[%s850_s0 + $0x10] sm:$0xff]  }
   0x5   :  { %608 = vmatprep.mubr.bf16.mxu0 %v648_v4  ;;  %616 = vmatprep.mubr.bf16.mxu1 %v649_v5  ;;  %v651_v11 = vld [vmem:[%s850_s0 + $0x28] sm:$0xff]   ;;  %v653_v13 = vld [vmem:[%s850_s0 + $0x30] sm:$0xff]   ;;  %v654_v14 = vld [vmem:[%s850_s0 + $0x18] sm:$0xff]  }
   0x6   :  { %v655_v15 = vld [vmem:[%s850_s0 + $0x38] sm:$0xff]   ;;  %v411_v16 = vld [vmem:[%s851_s2 + $0x10] sm:$0xff]  ;;  %v409_v18 = vld [vmem:[%s851_s2] sm:$0xff] }
   0x7   :  { %595 = vmatpush3.bf16.msra.mxu0 %v641_v1  ;;  %633 = vmatpush3.bf16.msra.mxu1 %v641_v1  ;;  %v419_v17 = vld [vmem:[%s851_s2 + $0x50] sm:$0xff]  ;;  %v417_v19 = vld [vmem:[%s851_s2 + $0x40] sm:$0xff]  ;;  %v412_v22 = vld [vmem:[%s851_s2 + $0x18] sm:$0xff] }
   0x8   :  { %596 = vmatprep.subr.bf16.mxu0 %v642_v2  ;;  %626 = vmatprep.subr.bf16.mxu1 %v642_v2  ;;  %v420_v23 = vld [vmem:[%s851_s2 + $0x58] sm:$0xff]  ;;  %v410_v28 = vld [vmem:[%s851_s2 + $0x8] sm:$0xff] }
   0x9   :  { %v418_v29 = vld [vmem:[%s851_s2 + $0x48] sm:$0xff] }
   0xb   :  { %597 = vmatpush3.bf16.msra.mxu0 %v642_v2  ;;  %634 = vmatpush3.bf16.msra.mxu1 %v642_v2 }
   0xc   :  { %598 = vmatprep.subr.bf16.mxu0 %v643_v3  ;;  %627 = vmatprep.subr.bf16.mxu1 %v643_v3 }
   0xf   :  { %599 = vmatpush3.bf16.msra.mxu0 %v643_v3  ;;  %635 = vmatpush3.bf16.msra.mxu1 %v643_v3 }
  0x10   :  { %600 = vmatprep.subr.bf16.mxu0 %v644_v6  ;;  %628 = vmatprep.subr.bf16.mxu1 %v644_v6 }
  0x13   :  { %601 = vmatpush3.bf16.msra.mxu0 %v644_v6  ;;  %636 = vmatpush3.bf16.msra.mxu1 %v644_v6 }
  0x14   :  { %602 = vmatprep.subr.bf16.mxu0 %v645_v7  ;;  %629 = vmatprep.subr.bf16.mxu1 %v645_v7 }
  0x17   :  { %603 = vmatpush3.bf16.msra.mxu0 %v645_v7  ;;  %637 = vmatpush3.bf16.msra.mxu1 %v645_v7 }
  0x18   :  { %604 = vmatprep.subr.bf16.mxu0 %v646_v8  ;;  %630 = vmatprep.subr.bf16.mxu1 %v646_v8 }
  0x1b   :  { %605 = vmatpush3.bf16.msra.mxu0 %v646_v8  ;;  %638 = vmatpush3.bf16.msra.mxu1 %v646_v8 }
  0x1c   :  { %606 = vmatprep.subr.bf16.mxu0 %v647_v9  ;;  %631 = vmatprep.subr.bf16.mxu1 %v647_v9 }
  0x1f   :  { %607 = vmatpush3.bf16.msra.mxu0 %v647_v9  ;;  %639 = vmatpush3.bf16.msra.mxu1 %v647_v9 }
  0x22   :  { %609 = vmatmul.mubr.bf16.vlgmr.msra.gmra.mrb[0].mxu0 %v650_v10  ;;  %617 = vmatmul.mubr.bf16.vlgmr.msra.gmra.mrb[0].mxu1 %v651_v11 }
  0x23   :  { %612 = vmatprep.mubr.bf16.mxu0 %v652_v12  ;;  %620 = vmatprep.mubr.bf16.mxu1 %v653_v13 }
  0x2a   :  { %613 = vmatmul.mubr.bf16.gmra.mrb[4].mxu0 %v654_v14  ;;  %621 = vmatmul.mubr.bf16.gmra.mrb[4].mxu1 %v655_v15 }
  0xf5   :  { %v610_v20 = vpop.f32.mrb[0].mxu0  ;;  %v618_v21 = vpop.f32.mrb[0].mxu1 }
  0xf6   :  { %v443_v24 = vadd.f32 %v610_v20, %v411_v16  ;;  %v451_v25 = vadd.f32 %v618_v21, %v419_v17  ;;  %v215_v26 = vpop.f32.mrb[1].mxu0  ;;  %v247_v27 = vpop.f32.mrb[1].mxu1 }
  0xf7   :  { %v441_v30 = vadd.f32 %v409_v18, %v215_v26  ;;  %v449_v31 = vadd.f32 %v417_v19, %v247_v27  ;;  %v611_v32 = vpop.f32.mrb[2].mxu0  ;;  %v619_v33 = vpop.f32.mrb[2].mxu1 }
  0xf8   :  { %459 = vst [vmem:[%s852_s4 + $0x10] sm:$0xff] %v443_v24  ;;  %467 = vst [vmem:[%s852_s4 + $0x50] sm:$0xff] %v451_v25  ;;  %v537_v34 = vpack.c.bf16 %v611_v32, %v610_v20  ;;  %v444_v35 = vadd.f32 %v611_v32, %v412_v22  ;;  %v557_v36 = vpack.c.bf16 %v619_v33, %v618_v21  ;;  %v218_v38 = vpop.f32.mrb[3].mxu0  ;;  %v250_v39 = vpop.f32.mrb[3].mxu1 }
  0xf9   :  { %v452_v37 = vadd.f32 %v619_v33, %v420_v23  ;;  %457 = vst [vmem:[%s852_s4] sm:$0xff] %v441_v30  ;;  %465 = vst [vmem:[%s852_s4 + $0x40] sm:$0xff] %v449_v31  ;;  %v532_v40 = vpack.c.bf16 %v218_v38, %v215_v26  ;;  %v442_v41 = vadd.f32 %v410_v28, %v218_v38 }
  0xfa   :  { %v552_v42 = vpack.c.bf16 %v250_v39, %v247_v27  ;;  %v450_v43 = vadd.f32 %v418_v29, %v250_v39  ;;  %569 = vst [vmem:[%s853_s3 + $0x8] sm:$0xff] %v537_v34   ;;  %460 = vst [vmem:[%s852_s4 + $0x18] sm:$0xff] %v444_v35 }
  0xfb   :  { %573 = vst [vmem:[%s853_s3 + $0x28] sm:$0xff] %v557_v36   ;;  %468 = vst [vmem:[%s852_s4 + $0x58] sm:$0xff] %v452_v37 }
  0xfc   :  { %533 = vst [vmem:[%s853_s3] sm:$0xff] %v532_v40   ;;  %458 = vst [vmem:[%s852_s4 + $0x8] sm:$0xff] %v442_v41 }
  0xfd   :  { %572 = vst [vmem:[%s853_s3 + $0x20] sm:$0xff] %v552_v42   ;;  %466 = vst [vmem:[%s852_s4 + $0x48] sm:$0xff] %v450_v43  ;;  %v614_v48 = vpop.f32.mrb[4].mxu0  ;;  %v622_v49 = vpop.f32.mrb[4].mxu1 }
  0xfe   :  { %v231_v54 = vpop.f32.mrb[5].mxu0  ;;  %v263_v55 = vpop.f32.mrb[5].mxu1 }
  0xff   :  { %v615_v60 = vpop.f32.mrb[6].mxu0  ;;  %v623_v61 = vpop.f32.mrb[6].mxu1 }
 0x100   :  { %v547_v62 = vpack.c.bf16 %v615_v60, %v614_v48  ;;  %v567_v0 = vpack.c.bf16 %v623_v61, %v622_v49  ;;  %v234_v2 = vpop.f32.mrb[7].mxu0  ;;  %v266_v3 = vpop.f32.mrb[7].mxu1 }
 0x101   :  { %v542_v4 = vpack.c.bf16 %v234_v2, %v231_v54  ;;  %v562_v6 = vpack.c.bf16 %v266_v3, %v263_v55 }
 0x102   :  { %571 = vst [vmem:[%s853_s3 + $0x18] sm:$0xff] %v547_v62   ;;  %575 = vst [vmem:[%s853_s3 + $0x38] sm:$0xff] %v567_v0  }
 0x103   :  { %570 = vst [vmem:[%s853_s3 + $0x10] sm:$0xff] %v542_v4   ;;  %574 = vst [vmem:[%s853_s3 + $0x30] sm:$0xff] %v562_v6  }
 0x104   :  { %v415_v44 = vld [vmem:[%s851_s2 + $0x30] sm:$0xff]  ;;  %v413_v46 = vld [vmem:[%s851_s2 + $0x20] sm:$0xff]  ;;  %v416_v50 = vld [vmem:[%s851_s2 + $0x38] sm:$0xff] }
 0x105   :  { %v423_v45 = vld [vmem:[%s851_s2 + $0x70] sm:$0xff]  ;;  %v421_v47 = vld [vmem:[%s851_s2 + $0x60] sm:$0xff]  ;;  %v424_v51 = vld [vmem:[%s851_s2 + $0x78] sm:$0xff]  ;;  %v447_v52 = vadd.f32 %v614_v48, %v415_v44  ;;  %v445_v58 = vadd.f32 %v413_v46, %v231_v54  ;;  %v448_v63 = vadd.f32 %v615_v60, %v416_v50 }
 0x106   :  { %v455_v53 = vadd.f32 %v622_v49, %v423_v45  ;;  %v414_v56 = vld [vmem:[%s851_s2 + $0x28] sm:$0xff]  ;;  %v453_v59 = vadd.f32 %v421_v47, %v263_v55  ;;  %v456_v1 = vadd.f32 %v623_v61, %v424_v51 }
 0x107   :  { %v422_v57 = vld [vmem:[%s851_s2 + $0x68] sm:$0xff]  ;;  %v446_v5 = vadd.f32 %v414_v56, %v234_v2 }
 0x108   :  { %463 = vst [vmem:[%s852_s4 + $0x30] sm:$0xff] %v447_v52  ;;  %471 = vst [vmem:[%s852_s4 + $0x70] sm:$0xff] %v455_v53  ;;  %v454_v7 = vadd.f32 %v422_v57, %v266_v3 }
 0x109   :  { %461 = vst [vmem:[%s852_s4 + $0x20] sm:$0xff] %v445_v58  ;;  %469 = vst [vmem:[%s852_s4 + $0x60] sm:$0xff] %v453_v59 }
 0x10a   :  { %464 = vst [vmem:[%s852_s4 + $0x38] sm:$0xff] %v448_v63  ;;  %472 = vst [vmem:[%s852_s4 + $0x78] sm:$0xff] %v456_v1 }
 0x10b   :  { %462 = vst [vmem:[%s852_s4 + $0x28] sm:$0xff] %v446_v5  ;;  %470 = vst [vmem:[%s852_s4 + $0x68] sm:$0xff] %v454_v7 }

// kernel: buir_nb_forward.4
= control target key start
LH: loop header
LB: loop body
LE: loop exit
PB: predicated region body
PF: predicated region fallthrough
CT: control target
= control target key end

     0   :  { %s903_s0 = inlined_call_operand.vmem [shape: bf16[128,128], index: 0, kind: input, shape index: {}]   ;;  %s904_s1 = inlined_call_operand.vmem [shape: bf16[128,128], index: 1, kind: input, shape index: {}]   ;;  %s905_s2 = inlined_call_operand.vmem [shape: f32[128,128], index: 2, kind: input, shape index: {}, may-alias: {2,4}]   ;;  %s906_s3 = inlined_call_operand.hbm [shape: bf16[128,128], index: 3, kind: output, shape index: {0}]   ;;  %s907_s4 = inlined_call_operand.vmem [shape: f32[128,128], index: 4, kind: output, shape index: {1}, may-alias: {2,4}]  }
   0x1   :  { %v672_v0 = vld [vmem:[%s904_s1] sm:$0xff]   ;;  %v673_v1 = vld [vmem:[%s904_s1 + $0x8] sm:$0xff]   ;;  %v674_v2 = vld [vmem:[%s904_s1 + $0x10] sm:$0xff]  }
   0x2   :  { %621 = vmatprep.subr.bf16.mxu0 %v672_v0  ;;  %653 = vmatprep.subr.bf16.mxu1 %v672_v0  ;;  %v675_v3 = vld [vmem:[%s904_s1 + $0x18] sm:$0xff]   ;;  %v680_v4 = vld [vmem:[%s903_s0] sm:$0xff]   ;;  %v677_v7 = vld [vmem:[%s904_s1 + $0x28] sm:$0xff]  }
   0x3   :  { %622 = vmatpush3.bf16.msra.mxu0 %v672_v0  ;;  %661 = vmatpush3.bf16.msra.mxu1 %v672_v0  ;;  %v681_v5 = vld [vmem:[%s903_s0 + $0x20] sm:$0xff]  }
   0x4   :  { %623 = vmatprep.subr.bf16.mxu0 %v673_v1  ;;  %654 = vmatprep.subr.bf16.mxu1 %v673_v1  ;;  %v676_v6 = vld [vmem:[%s904_s1 + $0x20] sm:$0xff]  }
   0x5   :  { %637 = vmatprep.mubr.bf16.mxu0 %v680_v4  ;;  %645 = vmatprep.mubr.bf16.mxu1 %v681_v5 }
   0x7   :  { %624 = vmatpush3.bf16.msra.mxu0 %v673_v1  ;;  %662 = vmatpush3.bf16.msra.mxu1 %v673_v1 }
   0x8   :  { %625 = vmatprep.subr.bf16.mxu0 %v674_v2  ;;  %655 = vmatprep.subr.bf16.mxu1 %v674_v2 }
   0xb   :  { %626 = vmatpush3.bf16.msra.mxu0 %v674_v2  ;;  %663 = vmatpush3.bf16.msra.mxu1 %v674_v2 }
   0xc   :  { %627 = vmatprep.subr.bf16.mxu0 %v675_v3  ;;  %656 = vmatprep.subr.bf16.mxu1 %v675_v3 }
   0xf   :  { %628 = vmatpush3.bf16.msra.mxu0 %v675_v3  ;;  %664 = vmatpush3.bf16.msra.mxu1 %v675_v3 }
  0x10   :  { %629 = vmatprep.subr.bf16.mxu0 %v676_v6  ;;  %657 = vmatprep.subr.bf16.mxu1 %v676_v6 }
  0x11   :  { %10 = vsyncpa [#allocation4], 0  ;;  %v678_v8 = vld [vmem:[%s904_s1 + $0x30] sm:$0xff]   ;;  %v679_v9 = vld [vmem:[%s904_s1 + $0x38] sm:$0xff]   ;;  %s712_s7 = smov [#allocation3]  }
  0x12   :  { %v682_v10 = vld [vmem:[%s903_s0 + $0x8] sm:$0xff]   ;;  %v684_v12 = vld [vmem:[%s903_s0 + $0x10] sm:$0xff]   ;;  %v686_v14 = vld [vmem:[%s903_s0 + $0x18] sm:$0xff]   ;;  %s495_s8 = sshll.u32 %s712_s7, 4  ;;  %s860_s8 = int_to_ptr.vmem [resolvable:$true] %s495_s8 }
  0x13   :  { %630 = vmatpush3.bf16.msra.mxu0 %v676_v6  ;;  %665 = vmatpush3.bf16.msra.mxu1 %v676_v6  ;;  %v683_v11 = vld [vmem:[%s903_s0 + $0x28] sm:$0xff]   ;;  %v685_v13 = vld [vmem:[%s903_s0 + $0x30] sm:$0xff]   ;;  %v687_v15 = vld [vmem:[%s903_s0 + $0x38] sm:$0xff]   ;;  %s688_s25 = scalar_lea.vmem %s860_s8, 1024  ;;  %p693_p1 = scmp.lt.s32.totalorder %s860_s8, %s860_s8 }
  0x14   :  { %631 = vmatprep.subr.bf16.mxu0 %v677_v7  ;;  %658 = vmatprep.subr.bf16.mxu1 %v677_v7  ;;  %v412_v16 = vld [vmem:[%s905_s2 + $0x10] sm:$0xff]  ;;  %v410_v18 = vld [vmem:[%s905_s2] sm:$0xff]  ;;  %v413_v22 = vld [vmem:[%s905_s2 + $0x18] sm:$0xff]  ;;  %p689_p0 = scmp.ne.s32.totalorder %s860_s8, %s688_s25  ;;  %p694_p2 = scmp.lt.s32.totalorder %s688_s25, %s688_s25 }
  0x15   :  { %v420_v17 = vld [vmem:[%s905_s2 + $0x50] sm:$0xff]  ;;  %v418_v19 = vld [vmem:[%s905_s2 + $0x40] sm:$0xff]  ;;  %v421_v27 = vld [vmem:[%s905_s2 + $0x58] sm:$0xff] }
  0x16   :  { %v411_v32 = vld [vmem:[%s905_s2 + $0x8] sm:$0xff]  ;;  %p695_p3 = por %p694_p2, %p693_p1 }
  0x17   :  { %632 = vmatpush3.bf16.msra.mxu0 %v677_v7  ;;  %666 = vmatpush3.bf16.msra.mxu1 %v677_v7  ;;  %v419_v33 = vld [vmem:[%s905_s2 + $0x48] sm:$0xff] }
  0x18   :  { %633 = vmatprep.subr.bf16.mxu0 %v678_v8  ;;  %659 = vmatprep.subr.bf16.mxu1 %v678_v8  ;;  %p696_p4 = pnand %p695_p3, %p689_p0 }
  0x1b   :  { %634 = vmatpush3.bf16.msra.mxu0 %v678_v8  ;;  %667 = vmatpush3.bf16.msra.mxu1 %v678_v8 }
  0x1c   :  { %635 = vmatprep.subr.bf16.mxu0 %v679_v9  ;;  %660 = vmatprep.subr.bf16.mxu1 %v679_v9 }
  0x1f   :  { %636 = vmatpush3.bf16.msra.mxu0 %v679_v9  ;;  %668 = vmatpush3.bf16.msra.mxu1 %v679_v9 }
  0x22   :  { %638 = vmatmul.mubr.bf16.vlgmr.msra.gmra.mrb[0].mxu0 %v682_v10  ;;  %646 = vmatmul.mubr.bf16.vlgmr.msra.gmra.mrb[0].mxu1 %v683_v11 }
  0x23   :  { %641 = vmatprep.mubr.bf16.mxu0 %v684_v12  ;;  %649 = vmatprep.mubr.bf16.mxu1 %v685_v13 }
  0x2a   :  { %642 = vmatmul.mubr.bf16.gmra.mrb[4].mxu0 %v686_v14  ;;  %650 = vmatmul.mubr.bf16.gmra.mrb[4].mxu1 %v687_v15 }
  0xf5   :  { %v639_v20 = vpop.f32.mrb[0].mxu0  ;;  %v647_v21 = vpop.f32.mrb[0].mxu1 }
  0xf6   :  { %v444_v23 = vadd.f32 %v639_v20, %v412_v16  ;;  %v452_v24 = vadd.f32 %v647_v21, %v420_v17  ;;  %v216_v25 = vpop.f32.mrb[1].mxu0  ;;  %v248_v26 = vpop.f32.mrb[1].mxu1 }
  0xf7   :  { %v442_v28 = vadd.f32 %v410_v18, %v216_v25  ;;  %v450_v29 = vadd.f32 %v418_v19, %v248_v26  ;;  %v640_v30 = vpop.f32.mrb[2].mxu0  ;;  %v648_v31 = vpop.f32.mrb[2].mxu1 }
  0xf8   :  { %v460_v34 = vmul.f32 0.33333334, %v444_v23  ;;  %v468_v35 = vmul.f32 0.33333334, %v452_v24  ;;  %v566_v36 = vpack.c.bf16 %v640_v30, %v639_v20  ;;  %v445_v37 = vadd.f32 %v640_v30, %v413_v22  ;;  %v219_v38 = vpop.f32.mrb[3].mxu0  ;;  %v251_v39 = vpop.f32.mrb[3].mxu1 }
  0xf9   :  { %v458_v40 = vmul.f32 0.33333334, %v442_v28  ;;  %v466_v41 = vmul.f32 0.33333334, %v450_v29  ;;  %v586_v42 = vpack.c.bf16 %v648_v31, %v647_v21  ;;  %v453_v43 = vadd.f32 %v648_v31, %v421_v27 }
  0xfa   :  { %476 = vst [vmem:[%s907_s4 + $0x10] sm:$0xff] %v460_v34  ;;  %484 = vst [vmem:[%s907_s4 + $0x50] sm:$0xff] %v468_v35  ;;  %v461_v44 = vmul.f32 0.33333334, %v445_v37  ;;  %v561_v45 = vpack.c.bf16 %v219_v38, %v216_v25  ;;  %v443_v46 = vadd.f32 %v411_v32, %v219_v38  ;;  %v581_v47 = vpack.c.bf16 %v251_v39, %v248_v26 }
  0xfb   :  { %598 = vst [vmem:[#allocation3 + $0x8] sm:$0xff] %v566_v36   ;;  %474 = vst [vmem:[%s907_s4] sm:$0xff] %v458_v40  ;;  %v469_v48 = vmul.f32 0.33333334, %v453_v43  ;;  %v451_v49 = vadd.f32 %v419_v33, %v251_v39 }
  0xfc   :  { %482 = vst [vmem:[%s907_s4 + $0x40] sm:$0xff] %v466_v41  ;;  %602 = vst [vmem:[#allocation3 + $0x28] sm:$0xff] %v586_v42   ;;  %v459_v52 = vmul.f32 0.33333334, %v443_v46 }
  0xfd   :  { %562 = vst [vmem:[#allocation3] sm:$0xff] %v561_v45   ;;  %601 = vst [vmem:[#allocation3 + $0x20] sm:$0xff] %v581_v47   ;;  %v467_v55 = vmul.f32 0.33333334, %v451_v49  ;;  %v643_v56 = vpop.f32.mrb[4].mxu0  ;;  %v651_v57 = vpop.f32.mrb[4].mxu1 }
  0xfe   :  { %v232_v61 = vpop.f32.mrb[5].mxu0  ;;  %v264_v62 = vpop.f32.mrb[5].mxu1 }
  0xff   :  { %v644_v2 = vpop.f32.mrb[6].mxu0  ;;  %v652_v3 = vpop.f32.mrb[6].mxu1 }
 0x100   :  { %v576_v8 = vpack.c.bf16 %v644_v2, %v643_v56  ;;  %v235_v10 = vpop.f32.mrb[7].mxu0  ;;  %v267_v11 = vpop.f32.mrb[7].mxu1  ;;  %v596_v14 = vpack.c.bf16 %v652_v3, %v651_v57 }
 0x101   :  { %v571_v17 = vpack.c.bf16 %v235_v10, %v232_v61  ;;  %v591_v19 = vpack.c.bf16 %v267_v11, %v264_v62 }
 0x102   :  { %600 = vst [vmem:[#allocation3 + $0x18] sm:$0xff] %v576_v8   ;;  %604 = vst [vmem:[#allocation3 + $0x38] sm:$0xff] %v596_v14  }
 0x103   :  { %v416_v50 = vld [vmem:[%s905_s2 + $0x30] sm:$0xff]  ;;  %599 = vst [vmem:[#allocation3 + $0x10] sm:$0xff] %v571_v17   ;;  %603 = vst [vmem:[#allocation3 + $0x30] sm:$0xff] %v591_v19  }
 0x104   :  { %v424_v51 = vld [vmem:[%s905_s2 + $0x70] sm:$0xff]  ;;  %v448_v59 = vadd.f32 %v643_v56, %v416_v50 }
 0x105   :  { %477 = vst [vmem:[%s907_s4 + $0x18] sm:$0xff] %v461_v44  ;;  %v456_v60 = vadd.f32 %v651_v57, %v424_v51 }
 0x106   :  { %v464_v6 = vmul.f32 0.33333334, %v448_v59 }
 0x107   :  { %v472_v7 = vmul.f32 0.33333334, %v456_v60 }
 0x10c   :  { %v414_v53 = vld [vmem:[%s905_s2 + $0x20] sm:$0xff] }
 0x10d   :  { %v422_v54 = vld [vmem:[%s905_s2 + $0x60] sm:$0xff]  ;;  %v446_v0 = vadd.f32 %v414_v53, %v232_v61 }
 0x10e   :  { %485 = vst [vmem:[%s907_s4 + $0x58] sm:$0xff] %v469_v48  ;;  %v454_v1 = vadd.f32 %v422_v54, %v264_v62 }
 0x10f   :  { %v462_v12 = vmul.f32 0.33333334, %v446_v0 }
 0x110   :  { %v470_v13 = vmul.f32 0.33333334, %v454_v1 }
 0x115   :  { %v417_v58 = vld [vmem:[%s905_s2 + $0x38] sm:$0xff] }
 0x116   :  { %475 = vst [vmem:[%s907_s4 + $0x8] sm:$0xff] %v459_v52  ;;  %v449_v9 = vadd.f32 %v644_v2, %v417_v58 }
 0x118   :  { %v465_v16 = vmul.f32 0.33333334, %v449_v9 }
 0x11d   :  { %v425_v63 = vld [vmem:[%s905_s2 + $0x78] sm:$0xff] }
 0x11e   :  { %483 = vst [vmem:[%s907_s4 + $0x48] sm:$0xff] %v467_v55  ;;  %v457_v15 = vadd.f32 %v652_v3, %v425_v63 }
 0x120   :  { %v473_v20 = vmul.f32 0.33333334, %v457_v15 }
 0x125   :  { %v415_v4 = vld [vmem:[%s905_s2 + $0x28] sm:$0xff] }
 0x126   :  { %v423_v5 = vld [vmem:[%s905_s2 + $0x68] sm:$0xff]  ;;  %v447_v18 = vadd.f32 %v415_v4, %v235_v10 }
 0x127   :  { %480 = vst [vmem:[%s907_s4 + $0x30] sm:$0xff] %v464_v6  ;;  %488 = vst [vmem:[%s907_s4 + $0x70] sm:$0xff] %v472_v7  ;;  %v455_v21 = vadd.f32 %v423_v5, %v267_v11 }
 0x128   :  { %478 = vst [vmem:[%s907_s4 + $0x20] sm:$0xff] %v462_v12  ;;  %486 = vst [vmem:[%s907_s4 + $0x60] sm:$0xff] %v470_v13  ;;  %v463_v22 = vmul.f32 0.33333334, %v447_v18 }
 0x129   :  { %481 = vst [vmem:[%s907_s4 + $0x38] sm:$0xff] %v465_v16  ;;  %489 = vst [vmem:[%s907_s4 + $0x78] sm:$0xff] %v473_v20  ;;  %v471_v23 = vmul.f32 0.33333334, %v455_v21 }
 0x12a   :  { %699 = shalt.err (!%p696_p4)
}
 0x12b   :  { %s700_s0 = scalar_lea.hbm %s906_s3, 1024 }
 0x12c   :  { %p701_p5 = scmp.ne.s32.totalorder %s906_s3, %s700_s0  ;;  %p704_p6 = scmp.lt.u32.totalorder %s700_s0, %s906_s3 }
 0x12e   :  { %p706_p7 = pnand %p704_p6, %p701_p5 }
 0x130   :  { %709 = shalt.err (!%p706_p7)
}
 0x131   :  { %s713_s6 = smov 64   ;;  %s714_s7 = smov 4   ;;  %479 = vst [vmem:[%s907_s4 + $0x28] sm:$0xff] %v463_v22  ;;  %487 = vst [vmem:[%s907_s4 + $0x68] sm:$0xff] %v471_v23 }
 0x132   :  { %501 = dma.vmem_to_hbm [thread:$0]  %s860_s8, 1024, %s906_s3, [#allocation4], %s713_s6, %s713_s6, %s714_s7  }
 0x133   :  { %710 = dma.done.wait [#allocation4], 1024  }
 0x134   :  { %711 = vsyncadd [#allocation4], 4294966272 }
 0x135   :  { %509 = vsyncpa [#allocation4], 1 }

// kernel: buir_nb_forward.5
= control target key start
LH: loop header
LB: loop body
LE: loop exit
PB: predicated region body
PF: predicated region fallthrough
CT: control target
= control target key end

     0   :  { %s289_s1 = inlined_call_operand.vmem [shape: f32[128,128], index: 1, kind: input, shape index: {}]   ;;  %s290_s0 = inlined_call_operand.vmem [shape: f32[16,128], index: 0, kind: input, shape index: {}]   ;;  %s291_s2 = inlined_call_operand.vmem [shape: f32[1,128], index: 2, kind: input, shape index: {}]   ;;  %s292_s3 = inlined_call_operand.vmem [shape: f32[16,128], index: 3, kind: output, shape index: {}]  }
   0x1   :  { %v16_v0 = vld [vmem:[%s289_s1] sm:$0xff]  ;;  %v17_v1 = vld [vmem:[%s289_s1 + $0x8] sm:$0xff]  ;;  %v18_v2 = vld [vmem:[%s289_s1 + $0x10] sm:$0xff] }
   0x2   :  { %v174_v3 = vpack.c.bf16 %v17_v1, %v16_v0  ;;  %v19_v4 = vld [vmem:[%s289_s1 + $0x18] sm:$0xff]  ;;  %v20_v6 = vld [vmem:[%s289_s1 + $0x20] sm:$0xff]  ;;  %v21_v7 = vld [vmem:[%s289_s1 + $0x28] sm:$0xff] }
   0x3   :  { %v178_v5 = vpack.c.bf16 %v19_v4, %v18_v2  ;;  %v182_v8 = vpack.c.bf16 %v21_v7, %v20_v6  ;;  %v14_v9 = vld [vmem:[%s290_s0] sm:$0xff]  ;;  %v22_v10 = vld [vmem:[%s289_s1 + $0x30] sm:$0xff]  ;;  %v23_v11 = vld [vmem:[%s289_s1 + $0x38] sm:$0xff] }
   0x4   :  { %175 = vmatprep.subr.bf16.mxu0 %v174_v3  ;;  %171 = vmatprep.mubr.f32.mxu0 %v14_v9  ;;  %v186_v12 = vpack.c.bf16 %v23_v11, %v22_v10  ;;  %v24_v13 = vld [vmem:[%s289_s1 + $0x40] sm:$0xff]  ;;  %v25_v14 = vld [vmem:[%s289_s1 + $0x48] sm:$0xff]  ;;  %v26_v16 = vld [vmem:[%s289_s1 + $0x50] sm:$0xff] }
   0x5   :  { %177 = vmatpush3.bf16.msra.mxu0 %v174_v3  ;;  %v190_v15 = vpack.c.bf16 %v25_v14, %v24_v13  ;;  %v27_v17 = vld [vmem:[%s289_s1 + $0x58] sm:$0xff]  ;;  %v28_v19 = vld [vmem:[%s289_s1 + $0x60] sm:$0xff]  ;;  %v29_v20 = vld [vmem:[%s289_s1 + $0x68] sm:$0xff] }
   0x6   :  { %179 = vmatprep.subr.bf16.mxu0 %v178_v5  ;;  %v194_v18 = vpack.c.bf16 %v27_v17, %v26_v16  ;;  %v198_v21 = vpack.c.bf16 %v29_v20, %v28_v19  ;;  %v30_v22 = vld [vmem:[%s289_s1 + $0x70] sm:$0xff]  ;;  %v31_v23 = vld [vmem:[%s289_s1 + $0x78] sm:$0xff]  ;;  %v15_v25 = vld [vmem:[%s290_s0 + $0x8] sm:$0xff] }
   0x7   :  { %v202_v24 = vpack.c.bf16 %v31_v23, %v30_v22  ;;  %v120_v26 = vld [vmem:[%s291_s2] ss:$0 sm:$0xff] }
   0x9   :  { %181 = vmatpush3.bf16.msra.mxu0 %v178_v5 }
   0xa   :  { %183 = vmatprep.subr.bf16.mxu0 %v182_v8 }
   0xd   :  { %185 = vmatpush3.bf16.msra.mxu0 %v182_v8 }
   0xe   :  { %187 = vmatprep.subr.bf16.mxu0 %v186_v12 }
  0x11   :  { %189 = vmatpush3.bf16.msra.mxu0 %v186_v12 }
  0x12   :  { %191 = vmatprep.subr.bf16.mxu0 %v190_v15 }
  0x15   :  { %193 = vmatpush3.bf16.msra.mxu0 %v190_v15 }
  0x16   :  { %195 = vmatprep.subr.bf16.mxu0 %v194_v18 }
  0x19   :  { %197 = vmatpush3.bf16.msra.mxu0 %v194_v18 }
  0x1a   :  { %199 = vmatprep.subr.bf16.mxu0 %v198_v21 }
  0x1d   :  { %201 = vmatpush3.bf16.msra.mxu0 %v198_v21 }
  0x1e   :  { %203 = vmatprep.subr.bf16.mxu0 %v202_v24 }
  0x21   :  { %205 = vmatpush3.bf16.msra.mxu0 %v202_v24 }
  0x24   :  { %172 = vmatmul.mubr.f32.vlgmr.msra.gmra.mrb[0].mxu0 %v15_v25 }
  0xf7   :  { %v173_v27 = vpop.f32.mrb[0].mxu0 }
  0xf8   :  { %v111_v28 = vadd.f32 %v173_v27, %v120_v26  ;;  %v105_v29 = vpop.f32.mrb[1].mxu0 }
  0xf9   :  { %v106_v30 = vadd.f32 %v120_v26, %v105_v29 }
  0xfa   :  { %115 = vst [vmem:[%s292_s3 + $0x8] sm:$0xff] %v111_v28 }
  0xfb   :  { %114 = vst [vmem:[%s292_s3] sm:$0xff] %v106_v30 }

</bundles_post_ra>
